<compile_context>
chip_gen: v7x
topology: tpu7x:2x2x1
jax: 0.10.0
libtpu: 0.0.40
codegen_flags: <defaults>
</compile_context>

<pallas_src>
import math

import jax
import jax.numpy as jnp
from jax.experimental import pallas as pl
from jax.experimental.pallas import tpu as pltpu


# ----------------------------------------------------------------------------
# Fixed sinusoidal positional embedding (matches the PyTorch _create_embedding)
# ----------------------------------------------------------------------------
def create_spatial_pos_embedding(height, width, channels, temperature=10000.0):
    # TODO(synk): like the reference, divides by (height-1)/(width-1); H==1 or
    # W==1 is degenerate (inf/NaN) in the original module as well.
    y_pos = jnp.arange(height, dtype=jnp.float32) / float(height - 1)
    x_pos = jnp.arange(width, dtype=jnp.float32) / float(width - 1)

    y_channels = channels // 2
    x_channels = channels - y_channels

    pos = jnp.zeros((channels, height, width), dtype=jnp.float32)

    n_y = y_channels // 2
    y_freq = jnp.exp(jnp.linspace(0.0, math.log(temperature), n_y))
    for i in range(n_y):
        f = y_freq[i]
        y_sin = jnp.sin(y_pos * f)[:, None]          # (H, 1)
        y_cos = jnp.cos(y_pos * f)[:, None]
        pos = pos.at[2 * i].set(jnp.broadcast_to(y_sin, (height, width)))
        pos = pos.at[2 * i + 1].set(jnp.broadcast_to(y_cos, (height, width)))

    n_x = x_channels // 2
    x_freq = jnp.exp(jnp.linspace(0.0, math.log(temperature), n_x))
    for i in range(n_x):
        f = x_freq[i]
        x_sin = jnp.sin(x_pos * f)[None, :]          # (1, W)
        x_cos = jnp.cos(x_pos * f)[None, :]
        pos = pos.at[y_channels + 2 * i].set(jnp.broadcast_to(x_sin, (height, width)))
        pos = pos.at[y_channels + 2 * i + 1].set(jnp.broadcast_to(x_cos, (height, width)))

    return pos  # (channels, H, W) float32


def prepare_pos_embedding(pos_emb, height, width, dtype):
    """Resize (bilinear, align_corners=False equivalent) + cast the pos table.

    Call once and reuse across forward calls; this is plain XLA glue, not part
    of the Pallas kernel.
    """
    p = pos_emb.shape[0]
    if pos_emb.shape[1:] != (height, width):
        # jax.image.resize 'bilinear' is half-pixel-centered, matching
        # F.interpolate(mode='bilinear', align_corners=False).
        pos_emb = jax.image.resize(pos_emb, (p, height, width), method="bilinear")
    return pos_emb.astype(dtype)


# ----------------------------------------------------------------------------
# Pallas kernel: channel concat on lane-dense (flattened-spatial) blocks
# ----------------------------------------------------------------------------
def _concat_kernel(x_ref, pos_ref, o_ref):
    # x_ref:   (1, C,   T)   one batch element, one spatial tile
    # pos_ref: (P,      T)   shared positional table tile (broadcast over batch)
    # o_ref:   (1, C+P, T)
    # Single full-block store: avoids the masked vst.msk + sublane merge that a
    # second store starting mid-(8,128) tile would trigger when C % packing != 0.
    o_ref[0] = jnp.concatenate([x_ref[0], pos_ref[...]], axis=0)


def _round_up(v, m):
    return -(-v // m) * m


def _pick_spatial_tile(hw, c_in, c_pos, dtype_bytes, vmem_budget_bytes, min_tiles):
    """Lane-dense spatial tile + sublane-padded per-spatial-element VMEM bytes."""
    # Sublane packing: f32 blocks pad to 8 rows, bf16 to 16, int8 to 32.
    pack = max(8, 32 // max(dtype_bytes, 1))
    c_in_p = _round_up(c_in, pack)
    c_pos_p = _round_up(c_pos, pack)
    c_out_p = _round_up(c_in + c_pos, pack)
    # Double-buffered x, pos and out blocks.
    per_elem = dtype_bytes * 2 * (c_in_p + c_pos_p + c_out_p)

    if hw < 256:
        # Too small to split into >1 lane-dense tiles: one full-extent block
        # (a full last-dim extent is always a legal BlockSpec).
        return hw, per_elem

    budget_t = max(128, (vmem_budget_bytes // per_elem) // 128 * 128)
    # Cap so there are at least `min_tiles` spatial grid steps: keeps both v7x
    # TensorCores fed (each has its own DMA path to HBM) even when B == 1.
    cap_t = max(128, (hw // min_tiles) // 128 * 128)
    return min(budget_t, cap_t), per_elem


def spatial_positional_embedding_forward(
    x,
    pos_emb,
    *,
    vmem_budget_bytes=8 << 20,
    min_spatial_tiles=2,
    small_bytes_threshold=256 << 10,
    force_pallas=False,
):
    """Forward pass of SpatialPositionalEmbedding.

    Args:
      x:       (B, C, H, W) input, NCHW.
      pos_emb: (P, Hp, Wp) fixed sinusoidal table (resized here if Hp/Wp differ).
    Returns:
      (B, C+P, H, W) with pos_emb concatenated along channels.
    """
    B, C, H, W = x.shape
    P = pos_emb.shape[0]

    pos_emb = prepare_pos_embedding(pos_emb, H, W, x.dtype)

    itemsize = jnp.dtype(x.dtype).itemsize
    total_out_bytes = B * (C + P) * H * W * itemsize
    if total_out_bytes < small_bytes_threshold and not force_pallas:
        # Small-problem fast path: pallas_call launch + ~0.35 us/step overhead
        # dominates at these sizes; XLA's fused concat copy is faster.
        pos_b = jnp.broadcast_to(pos_emb[None], (B, P, H, W))
        return jnp.concatenate([x, pos_b], axis=1)

    # Lane-dense layout: flatten spatial dims so the last axis maps onto the
    # 128-wide lane axis regardless of W (no masked partial stores when W<128).
    HW = H * W
    x_flat = x.reshape(B, C, HW)
    pos_flat = pos_emb.reshape(P, HW)

    T, per_elem = _pick_spatial_tile(
        HW, C, P, itemsize, vmem_budget_bytes, min_spatial_tiles
    )
    num_s = pl.cdiv(HW, T)

    # Make the compiler's scoped-VMEM limit agree with the tile choice:
    # padding-corrected estimate + headroom, capped at v7x's 64 MiB physical.
    vmem_limit = min(int(per_elem * T * 1.5) + (2 << 20), 64 << 20)

    out_flat = pl.pallas_call(
        _concat_kernel,
        out_shape=jax.ShapeDtypeStruct((B, C + P, HW), x.dtype),
        # Spatial tiles outer, batch inner: the pos block index is constant
        # across the inner batch loop, so it is not re-fetched per batch element.
        grid=(num_s, B),
        in_specs=[
            pl.BlockSpec((1, C, T), lambda s, b: (b, 0, s)),
            pl.BlockSpec((P, T), lambda s, b: (0, s)),
        ],
        out_specs=pl.BlockSpec((1, C + P, T), lambda s, b: (b, 0, s)),
        compiler_params=pltpu.CompilerParams(
            dimension_semantics=("parallel", "parallel"),
            vmem_limit_bytes=vmem_limit,
        ),
    )(x_flat, pos_flat)

    return out_flat.reshape(B, C + P, H, W)


if __name__ == "__main__":
    # Small shapes consistent with the module: B=2, C=4, H=W=16, pos channels=8.
    B, C, H, W = 2, 4, 16, 16
    POS_C = 8

    key = jax.random.PRNGKey(0)
    x = jax.random.normal(key, (B, C, H, W), dtype=jnp.float32)
    pos_emb = create_spatial_pos_embedding(H, W, POS_C, temperature=10000.0)

    # Force the Pallas path so the kernel is actually exercised at this small
    # shape (default small_bytes_threshold would take the XLA fast path).
    out = spatial_positional_embedding_forward(x, pos_emb, force_pallas=True)
    out = jax.block_until_ready(out)

    ref = jnp.concatenate(
        [x, jnp.broadcast_to(pos_emb[None], (B, POS_C, H, W)).astype(x.dtype)], axis=1
    )
    assert out.shape == (B, C + POS_C, H, W)
    assert jnp.allclose(out, ref, atol=1e-6), "mismatch vs reference (f32 path)"

    # Spatially tiled path (HW=512 -> >=2 lane-dense tiles) + bf16 packing path.
    H2, W2 = 16, 32
    x_b = jax.random.normal(jax.random.PRNGKey(1), (B, C, H2, W2), dtype=jnp.bfloat16)
    pos_b = create_spatial_pos_embedding(H2, W2, POS_C, temperature=10000.0)
    out_b = jax.block_until_ready(
        spatial_positional_embedding_forward(x_b, pos_b, force_pallas=True)
    )
    ref_b = jnp.concatenate(
        [x_b, jnp.broadcast_to(pos_b[None], (B, POS_C, H2, W2)).astype(jnp.bfloat16)],
        axis=1,
    )
    assert jnp.array_equal(out_b, ref_b), "mismatch vs reference (bf16 tiled path)"

    # Small-problem fast path (no Pallas) sanity check.
    out_fast = jax.block_until_ready(spatial_positional_embedding_forward(x, pos_emb))
    assert jnp.allclose(out_fast, ref, atol=1e-6), "mismatch vs reference (fast path)"

    print("KERNEL_OK")
</pallas_src>

<mosaic_0001>
module attributes {stable_mosaic.version = 11 : i64} {
  func.func @_concat_kernel(%arg0: i32, %arg1: i32, %arg2: memref<1x4x128xf32, #tpu.memory_space<vmem>>, %arg3: memref<8x128xf32, #tpu.memory_space<vmem>>, %arg4: memref<1x12x128xf32, #tpu.memory_space<vmem>>) attributes {dimension_semantics = [#tpu.dimension_semantics<parallel>, #tpu.dimension_semantics<parallel>], iteration_bounds = array<i64: 2, 2>, scalar_prefetch = 0 : i64, scratch_operands = 0 : i64, tpu.core_type = #tpu.core_type<tc>, window_params = [{transform_indices = @transform_0, window_bounds = array<i64: 1, 4, 128>}, {transform_indices = @transform_1, window_bounds = array<i64: 8, 128>}, {transform_indices = @transform_2, window_bounds = array<i64: 1, 12, 128>}]} {
    %c0 = arith.constant 0 : index
    %c0_0 = arith.constant 0 : index
    %c0_1 = arith.constant 0 : index
    %0 = vector.load %arg2[%c0, %c0_0, %c0_1] : memref<1x4x128xf32, #tpu.memory_space<vmem>>, vector<1x4x128xf32>
    %1 = vector.shape_cast %0 : vector<1x4x128xf32> to vector<4x128xf32>
    %c0_2 = arith.constant 0 : index
    %c0_3 = arith.constant 0 : index
    %2 = vector.load %arg3[%c0_2, %c0_3] : memref<8x128xf32, #tpu.memory_space<vmem>>, vector<8x128xf32>
    %3 = tpu.concatenate %1, %2 in 0 : vector<4x128xf32>, vector<8x128xf32> -> vector<12x128xf32>
    %c0_4 = arith.constant 0 : index
    %c0_5 = arith.constant 0 : index
    %c0_6 = arith.constant 0 : index
    %4 = vector.load %arg4[%c0_4, %c0_5, %c0_6] : memref<1x12x128xf32, #tpu.memory_space<vmem>>, vector<1x12x128xf32>
    %5 = vector.shape_cast %4 : vector<1x12x128xf32> to vector<12x128xf32>
    %6 = vector.shape_cast %3 : vector<12x128xf32> to vector<1x12x128xf32>
    tpu.vector_store %arg4[%c0_4, %c0_5, %c0_6], %6 {strides = array<i32>} : memref<1x12x128xf32, #tpu.memory_space<vmem>>, vector<1x12x128xf32>,
    return
  }
  func.func @transform_0(%arg0: i32, %arg1: i32) -> (i32, i32, i32) {
    %c0_i32 = arith.constant 0 : i32
    %c0_i32_0 = arith.constant 0 : i32
    return %arg1, %c0_i32, %arg0 : i32, i32, i32
  }
  func.func @transform_1(%arg0: i32, %arg1: i32) -> (i32, i32) {
    %c0_i32 = arith.constant 0 : i32
    %c0_i32_0 = arith.constant 0 : i32
    return %c0_i32, %arg0 : i32, i32
  }
  func.func @transform_2(%arg0: i32, %arg1: i32) -> (i32, i32, i32) {
    %c0_i32 = arith.constant 0 : i32
    %c0_i32_0 = arith.constant 0 : i32
    return %arg1, %c0_i32, %arg0 : i32, i32, i32
  }
}

</mosaic_0001>

<bundles_post_ra>
// kernel: tpu_custom_call.1
= control target key start
LH: loop header
LB: loop body
LE: loop exit
PB: predicated region body
PF: predicated region fallthrough
CT: control target
= control target key end

     0   :  { %s924_s0 = inlined_call_operand.hbm [shape: f32[2,4,256], index: 0, kind: input, shape index: {}]   ;;  %s925_s1 = inlined_call_operand.hbm [shape: f32[8,256], index: 1, kind: input, shape index: {}]   ;;  %s926_s2 = inlined_call_operand.vmem [shape: f32[2,12,256], index: 2, kind: output, shape index: {}]  }
   0x1   :  { %932 = sst [smem:[#allocation10_spill]] %s924_s0 }
   0x2   :  { %7 = vsyncpa [#allocation3], 0 }
   0x3   :  { %9 = vsyncpa [#allocation3 + $0x1], 0 }
   0x4   :  { %10 = vsyncpa [#allocation5], 0 }
   0x5   :  { %12 = vsyncpa [#allocation5 + $0x1], 0  ;;  %s657_s9 = smov 0   ;;  %s659_s10 = smov 0  }
   0x6   :  { %s661_s11 = smov 0   ;;  %s663_s12 = smov 0  }
   0x7   :  { %s665_s13 = smov 0   ;;  %s667_s14 = smov 0  }
   0x8   :  { %s669_s15 = smov 0   ;;  %s671_s16 = smov 0  }
   0x9   :  { %s673_s17 = smov 0   ;;  %s675_s18 = smov 0  }
   0xa   :  { %s677_s19 = smov 0  }
   0xb LB: > { %s366_s20 = sadd.s32 4294967295, %s638_s19   ;;  %s27_s21 = sadd.s32 1, %s630_s17  ;;  %s638_s19 = sphi %s677_s19, %s18_s19   ;;  %s634_s18 = sphi %s675_s18, %s961_s18   ;;  %s630_s17 = sphi %s673_s17, %s960_s17   ;;  %s626_s16 = sphi %s671_s16, %s959_s16   ;;  %s622_s15 = sphi %s669_s15, %s958_s15   ;;  %s618_s14 = sphi %s667_s14, %s957_s14   ;;  %s614_s13 = sphi %s665_s13, %s956_s13   ;;  %s610_s12 = sphi %s663_s12, %s955_s12   ;;  %s606_s11 = sphi %s661_s11, %s954_s11   ;;  %s602_s10 = sphi %s659_s10, %s953_s10   ;;  %s598_s9 = sphi %s657_s9, %s952_s9  }
   0xc   : > { %p28_p0 = scmp.ge.s32.totalorder %s27_s21, 2  ;;  %s30_s22 = sadd.s32 1, %s634_s18 }
   0xd   : > { %s39_s23 = sadd.s32 1, %s618_s14  ;;  %p46_p1 = scmp.ne.s32.totalorder %s618_s14, %s614_s13 }
   0xe   : > { %s963_s21 = smov (%p28_p0, %s27_s21), 0  ;;  %s965_s22 = smov (!%p28_p0, %s30_s22), %s634_s18 }
   0xf   : > { %s34_s24 = ssub.s32 %s630_s17, %s963_s21  ;;  %p929_p2 = scmp.eq.s32.totalorder %s638_s19, 0 }
  0x10   : > { %p32_p3 = scmp.ge.s32.totalorder %s965_s22, 2  ;;  %p52_p4 = scmp.ne.s32.totalorder %s614_s13, %s610_s12 }
  0x11   : > { %p728_p5 = por %p929_p2, %p46_p1  ;;  %p732_p6 = scmp.eq.s32.totalorder %s366_s20, 0 }
  0x12   : > { %s967_s22 = smov (%p32_p3, %s965_s22), 0  ;;  %p104_p8 = scmp.eq.s32.totalorder %s366_s20, 3 }
  0x13   : > { %935 = sst [smem:[#allocation9_spill]] %s967_s22  ;;  %p740_p7 = por %p732_p6, %p52_p4 }
  0x14   : > { %s746_s28 = ssub.s32 %s634_s18, %s967_s22  ;;  %p753_p11 = por %p104_p8, %p46_p1 }
  0x15   : > { %s936_s27 = scalar_select %p740_p7, 1, 0 }
  0x16   : > { %s36_s29 = sor.u32 %s746_s28, %s34_s24  ;;  %p928_p12 = scmp.lt.s32.totalorder %s638_s19, 4 }
  0x17   : > { %p37_p10 = scmp.eq.s32.totalorder %s36_s29, 0  ;;  %s130_s3 = sand.u32 1, %s618_s14  }
  0x18   : > { %s937_s30 = scalar_select %p753_p11, 1, 0 }
  0x19   : > { %s760_s4 = scalar_select %p37_p10, %s618_s14, %s39_s23  }
  0x1a   : > { %s370_s5 = sshll.u32 %s130_s3, 2  ;;  %s371_s6 = sshll.u32 %s630_s17, 1 }
  0x1b   : > { %s139_s7 = sadd.s32 %s634_s18, %s371_s6  ;;  %s134_s8 = scalar_lea.vmem [#allocation2], %s370_s5 }
  0x1c   : > { %s143_s12 = sshll.u32 %s134_s8, 4  ;;  %s372_s20 = sshll.u32 %s139_s7, 6  ;;  %s764_s12 = int_to_ptr.vmem [resolvable:$true] %s143_s12 }
  0x1d   : > { %s938_s0 = sld [smem:[#allocation10_spill]]  ;;  %p775_p13 = pnand %p928_p12, %p728_p5 }
  0x1e   : > { %s131_s5 = scalar_lea.sflag [#allocation3], %s130_s3 }
  0x1f   : > { %p486_p4 = pneg %p775_p13 }
  0x23   : > { %s769_s29 = scalar_lea.hbm %s938_s0, %s372_s20  ;;  %s489_s7 = scalar_lea.hbm %s938_s0, 256 }
  0x24   : > { %s484_s6 = scalar_lea.hbm %s769_s29, 64  ;;  %p490_p5 = scmp.lt.u32.totalorder %s769_s29, %s938_s0 }
  0x25   : > { %p485_p3 = scmp.ne.s32.totalorder %s769_s29, %s484_s6  ;;  %p491_p12 = scmp.lt.u32.totalorder %s489_s7, %s484_s6 }
  0x26   : > { %p493_p9 = scmp.lt.u32.totalorder %s484_s6, %s769_s29 }
  0x27   : > { %p487_p8 = pnand %p486_p4, %p485_p3  ;;  %p492_p2 = por %p491_p12, %p490_p5 }
  0x29   : > { %p488_p10 = pneg %p487_p8  ;;  %p494_p0 = por %p493_p9, %p492_p2 }
  0x2b   : > { %p495_p1 = pnand %p494_p0, %p488_p10 }
  0x2d   : > { %498 = shalt.err (!%p495_p1)
}
  0x2e   : > { %s499_s3 = scalar_lea.vmem %s764_s12, 64  ;;  %s640_s24 = smov [#allocation2]  }
  0x2f   : > { %p500_p3 = scmp.ne.s32.totalorder %s764_s12, %s499_s3  ;;  %s504_s22 = sshll.u32 %s640_s24, 4  ;;  %s505_s22 = int_to_ptr.vmem [resolvable:$false] %s504_s22 }
  0x30   : > { %s506_s25 = scalar_lea.vmem %s505_s22, 128  ;;  %p507_p7 = scmp.lt.s32.totalorder %s764_s12, %s505_s22 }
  0x31   : > { %p502_p8 = pnand %p500_p3, %p486_p4  ;;  %p508_p12 = scmp.lt.s32.totalorder %s506_s25, %s499_s3 }
  0x33   : > { %p503_p11 = pneg %p502_p8  ;;  %p509_p5 = por %p508_p12, %p507_p7 }
  0x35   : > { %p510_p2 = pnand %p509_p5, %p503_p11 }
  0x37   : > { %513 = shalt.err (!%p510_p2)
}
  0x38   : > { %391 = dma.hbm_to_vmem [thread:$0]  (!%p775_p13), %s769_s29, 64, %s764_s12, %s131_s5  }
  0x39   : > { %p940_p7 = scmp.lt.s32.totalorder %s638_s19, 5  ;;  %p941_p9 = scmp.ge.s32.totalorder %s638_s19, 1 }
  0x3a   : > { %s65_s6 = sadd.s32 1, %s606_s11  ;;  %p72_p0 = scmp.ne.s32.totalorder %s606_s11, %s602_s10 }
  0x3b   : > { %p810_p11 = pnand %p941_p9, %p940_p7  ;;  %p943_p1 = scmp.eq.s32.totalorder %s746_s28, 0 }
  0x3c   : > { %p944_p4 = scmp.eq.s32.totalorder %s638_s19, 0  ;;  %p78_p3 = scmp.ne.s32.totalorder %s602_s10, %s598_s9 }
  0x3d   : > { %s820_s7 = scalar_select %p943_p1, %s606_s11, %s65_s6  }
  0x3e   : > { %p74_p10 = por %p72_p0, %p944_p4  ;;  %s150_s8 = sand.u32 1, %s606_s11  }
  0x3f   : > { %s374_s20 = sshll.u32 %s634_s18, 7  ;;  %p830_p8 = por %p78_p3, %p732_p6 }
  0x40   : > { %s373_s12 = sshll.u32 %s150_s8, 3  ;;  %s837_s24 = scalar_lea.hbm %s925_s1, %s374_s20 }
  0x41   : > { %s945_s3 = scalar_select %p830_p8, 1, 0 }
  0x42   : > { %p946_p13 = scmp.lt.s32.totalorder %s638_s19, 4  ;;  %s154_s26 = scalar_lea.vmem [#allocation4], %s373_s12 }
  0x43   : > { %s161_s28 = sshll.u32 %s154_s26, 4  ;;  %s151_s22 = scalar_lea.sflag [#allocation5], %s150_s8  ;;  %s845_s28 = int_to_ptr.vmem [resolvable:$true] %s161_s28 }
  0x44   : > { %p841_p12 = pnand %p946_p13, %p74_p10  ;;  %s514_s25 = scalar_lea.hbm %s837_s24, 128 }
  0x45   : > { %p515_p6 = scmp.ne.s32.totalorder %s837_s24, %s514_s25  ;;  %s519_s29 = scalar_lea.hbm %s925_s1, 256 }
  0x46   : > { %p516_p5 = pneg %p841_p12  ;;  %p520_p9 = scmp.lt.u32.totalorder %s837_s24, %s925_s1 }
  0x47   : > { %p521_p0 = scmp.lt.u32.totalorder %s519_s29, %s514_s25  ;;  %p523_p4 = scmp.lt.u32.totalorder %s514_s25, %s837_s24 }
  0x48   : > { %p517_p2 = pnand %p516_p5, %p515_p6 }
  0x49   : > { %p522_p1 = por %p521_p0, %p520_p9 }
  0x4a   : > { %p518_p7 = pneg %p517_p2 }
  0x4b   : > { %p524_p10 = por %p523_p4, %p522_p1 }
  0x4d   : > { %p525_p3 = pnand %p524_p10, %p518_p7 }
  0x4f   : > { %528 = shalt.err (!%p525_p3)
}
  0x50   : > { %s529_s8 = scalar_lea.vmem %s845_s28, 128  ;;  %s641_s12 = smov [#allocation4]  }
  0x51   : > { %p530_p13 = scmp.ne.s32.totalorder %s845_s28, %s529_s8  ;;  %s534_s26 = sshll.u32 %s641_s12, 4  ;;  %s535_s26 = int_to_ptr.vmem [resolvable:$false] %s534_s26 }
  0x52   : > { %s536_s0 = scalar_lea.vmem %s535_s26, 256  ;;  %p537_p8 = scmp.lt.s32.totalorder %s845_s28, %s535_s26 }
  0x53   : > { %p532_p6 = pnand %p530_p13, %p516_p5  ;;  %p538_p9 = scmp.lt.s32.totalorder %s536_s0, %s529_s8 }
  0x55   : > { %p533_p2 = pneg %p532_p6  ;;  %p539_p0 = por %p538_p9, %p537_p8 }
  0x57   : > { %p540_p1 = pnand %p539_p0, %p533_p2 }
  0x59   : > { %543 = shalt.err (!%p540_p1)
}
  0x5a   : > { %394 = dma.hbm_to_vmem [thread:$0]  (!%p841_p12), %s837_s24, 128, %s845_s28, %s151_s22  }
  0x5b   : > { %170 = sbr.rel (%p810_p11) target bundleno = 116 (0x74), region = 28  ;;  %s172_s25 = sand.u32 (!%p810_p11), 1, %s614_s13  }
  0x5c   : > { %s376_s6 = sshll.u32 (!%p810_p11), %s172_s25, 2  ;;  %s173_s20 = scalar_lea.sflag (!%p810_p11), [#allocation3], %s172_s25 }
  0x5d   : > { %s176_s29 = scalar_lea.vmem (!%p810_p11), [#allocation2], %s376_s6  ;;  %p948_p5 = scmp.ne.s32.totalorder (!%p810_p11), %s936_s27, 0 }
  0x62   : > { %589 = dma.done.wait (%p948_p5), %s173_s20, 64  }
  0x63   : > { %591 = vsyncadd (%p948_p5), %s173_s20, 4294967232  ;;  %s181_s9 = sand.u32 1, %s602_s10   ;;  %p949_p8 = scmp.ne.s32.totalorder %s945_s3, 0 }
  0x64   : > { %s377_s5 = sshll.u32 %s181_s9, 3  ;;  %s182_s8 = scalar_lea.sflag [#allocation5], %s181_s9 }
  0x65   : > { %s185_s24 = scalar_lea.vmem [#allocation4], %s377_s5 }
  0x66   : > { %593 = dma.done.wait (%p949_p8), %s182_s8, 128  }
  0x67   : > { %595 = vsyncadd (%p949_p8), %s182_s8, 4294967168  ;;  %s378_s23 = sshll.u32 %s172_s25, 4  ;;  %v210_v0 = vld [vmem:[%s176_s29] sm:$0xf]  ;;  %v211_v1 = vld [vmem:[%s185_s24] sm:$0xff]  ;;  %vm215_vm0 = vcmask 1043456  }
  0x68   : > { %v213_v2 = vrot.slane %v211_v1, 4  ;;  %s209_s28 = scalar_lea.vmem [#allocation6], %s378_s23  ;;  %p950_p11 = scmp.ne.s32.totalorder %s937_s30, 0 }
  0x69   : > { %s380_s27 = sshll.u32 (%p950_p11), %s622_s15, 2 }
  0x6a   : > { %v216_v3 = vsel %vm215_vm0, %v210_v0, %v213_v2  ;;  %218 = vst [vmem:[%s209_s28 + $0x8] sm:$0xf] %v213_v2  ;;  %225 = sbr.rel (!%p950_p11) target bundleno = 116 (0x74), region = 40  ;;  %s227_s22 = sadd.s32 (%p950_p11), %s626_s16, %s380_s27 }
  0x6b   : > { %217 = vst [vmem:[%s209_s28] sm:$0xff] %v216_v3  ;;  %s381_s3 = sshll.u32 (%p950_p11), %s227_s22, 3 }
  0x6c   : > { %s229_s0 = scalar_lea.vmem (%p950_p11), %s926_s2, %s381_s3 }
  0x71   : > { %v261_v5 = vld [vmem:[%s209_s28 + $0x8] sm:$0xff] }
  0x72   : > { %v259_v4 = vld [vmem:[%s209_s28] sm:$0xff]  ;;  %262 = vst [vmem:[%s229_s0 + $0x10] sm:$0xff] %v261_v5 }
  0x73   : > { %260 = vst [vmem:[%s229_s0] sm:$0xff] %v259_v4 }
  0x74 PF: > { %s18_s19 = sadd.s32 1, %s638_s19   ;;  %s951_s30 = sld [smem:[#allocation9_spill]] }
  0x75   : > { %p15_p12 = scmp.ge.s32.totalorder %s18_s19, 6   ;;  %s952_s9 = smov %s602_s10 }
  0x76   : > { %s953_s10 = smov %s606_s11  ;;  %s954_s11 = smov %s820_s7 }
  0x77   : > { %s955_s12 = smov %s614_s13  ;;  %s956_s13 = smov %s618_s14 }
  0x78   : > { %s957_s14 = smov %s760_s4  ;;  %s958_s15 = smov %s630_s17 }
  0x79   : > { %s959_s16 = smov %s634_s18  ;;  %s960_s17 = smov %s963_s21 }
  0x7a   : > { %s961_s18 = smov %s951_s30  ;;  %17 = sbr.rel (!%p15_p12) target bundleno = 11 (0xb), region = 119 }
  0x81   :  { %278 = vsyncpa [#allocation3], 1 }
  0x82   :  { %280 = vsyncpa [#allocation3 + $0x1], 1 }
  0x83   :  { %281 = vsyncpa [#allocation5], 1 }
  0x84   :  { %283 = vsyncpa [#allocation5 + $0x1], 1 }

</bundles_post_ra>
